<compile_context>
chip_gen: v7x
topology: tpu7x:2x2x1
jax: 0.10.0
libtpu: 0.0.40
codegen_flags: <defaults>
</compile_context>

<pallas_src>
import functools

import jax
import jax.numpy as jnp
from jax.experimental import pallas as pl
from jax.experimental.pallas import tpu as pltpu

LANES = 128            # lane (last-dim) width of the 2D slab
MAX_BLOCK_ROWS = 2048  # 2048 * 128 * 4B = 1 MiB per f32 input block
CORE_SPLIT = 2         # leading "parallel" grid axis (both TCs on v7x)


def _sumsq_kernel(x_ref, y_ref, o_ref, acc_ref, *,
                  block_rows, rows, num_blocks, steps_per_core, mask_rows):
    """Per-core partial sum of squared differences.

    grid = (core_split, steps_per_core); axis 0 is "parallel" (megacore
    split), axis 1 is the sequential reduction over row-blocks of the slab.
    """
    c = pl.program_id(0)
    i = pl.program_id(1)
    blk = c * steps_per_core + i          # logical row-block for this step

    @pl.when(i == 0)
    def _():
        acc_ref[...] = jnp.zeros_like(acc_ref)

    # Full blocks: mask-free elementwise VPU work only.
    num_full_blocks = num_blocks - 1 if mask_rows else num_blocks

    @pl.when(blk < num_full_blocks)
    def _():
        d = x_ref[...].astype(jnp.float32) - y_ref[...].astype(jnp.float32)
        acc_ref[...] += d * d

    if mask_rows:
        # The single ragged last block: rows past `rows` hold undefined data.
        tail_rows = rows - (num_blocks - 1) * block_rows   # static

        @pl.when(blk == num_blocks - 1)
        def _():
            d = x_ref[...].astype(jnp.float32) - y_ref[...].astype(jnp.float32)
            row_ids = jax.lax.broadcasted_iota(jnp.int32, d.shape, 0)
            d = jnp.where(row_ids < tail_rows, d, 0.0)
            acc_ref[...] += d * d

    # Overshoot steps (blk >= num_blocks) contribute nothing.

    @pl.when(i == pl.num_programs(1) - 1)
    def _():
        o_ref[0, 0] = jnp.sum(acc_ref[...])   # single XLU reduce per core


def rmse_loss(x, y):
    assert x.shape == y.shape, "x and y must have the same shape"
    n = x.size  # true element count (mean is over original elements)

    xf = jnp.ravel(x)   # free for contiguous row-major inputs
    yf = jnp.ravel(y)

    # Pad to the next multiple of 128 lanes only if needed (<=127 zeros).
    rem = n % LANES
    if rem:
        pad = LANES - rem
        xf = jnp.pad(xf, (0, pad))
        yf = jnp.pad(yf, (0, pad))
    rows = xf.size // LANES
    x2 = xf.reshape(rows, LANES)
    y2 = yf.reshape(rows, LANES)

    block_rows = min(MAX_BLOCK_ROWS, rows)          # either 8-aligned or full dim
    num_blocks = pl.cdiv(rows, block_rows)
    core_split = CORE_SPLIT if num_blocks > 1 else 1
    steps_per_core = pl.cdiv(num_blocks, core_split)
    mask_rows = (rows % block_rows) != 0            # ragged last block?
    last_block = num_blocks - 1

    def in_map(c, i):
        # Clamp so overshoot steps re-fetch a valid block; their contribution
        # is skipped in-kernel (blk >= num_blocks hits no pl.when branch).
        return (jnp.minimum(c * steps_per_core + i, last_block), 0)

    kernel = functools.partial(
        _sumsq_kernel,
        block_rows=block_rows, rows=rows, num_blocks=num_blocks,
        steps_per_core=steps_per_core, mask_rows=mask_rows)

    elem_bytes = x2.dtype.itemsize + y2.dtype.itemsize

    partials = pl.pallas_call(
        kernel,
        out_shape=jax.ShapeDtypeStruct((core_split, 1), jnp.float32),
        grid_spec=pltpu.PrefetchScalarGridSpec(
            num_scalar_prefetch=0,
            grid=(core_split, steps_per_core),
            in_specs=[
                pl.BlockSpec((block_rows, LANES), in_map),
                pl.BlockSpec((block_rows, LANES), in_map),
            ],
            out_specs=pl.BlockSpec((1, 1), lambda c, i: (c, 0),
                                   memory_space=pltpu.SMEM),
            # Block-shaped f32 VMEM accumulator: better accuracy than a
            # running scalar and keeps the hot loop off the XLU/SMEM path.
            scratch_shapes=[pltpu.VMEM((block_rows, LANES), jnp.float32)],
        ),
        compiler_params=pltpu.CompilerParams(
            dimension_semantics=("parallel", "arbitrary")),
        cost_estimate=pl.CostEstimate(
            flops=3 * rows * LANES, transcendentals=0,
            bytes_accessed=rows * LANES * elem_bytes),
    )(x2, y2)

    total = jnp.sum(partials)
    out = jnp.sqrt(total / jnp.float32(n))
    return out.astype(jnp.promote_types(x.dtype, y.dtype))


if __name__ == "__main__":
    key = jax.random.PRNGKey(0)
    kx, ky = jax.random.split(key)
    # Small shapes consistent with a typical NCHW prediction/target pair.
    x = jax.random.normal(kx, (2, 4, 16, 16), dtype=jnp.float32)
    y = jax.random.normal(ky, (2, 4, 16, 16), dtype=jnp.float32)

    loss = rmse_loss(x, y)
    jax.block_until_ready(loss)

    # Sanity check against a pure-JAX reference.
    ref = jnp.sqrt(jnp.mean((x - y) ** 2))
    assert jnp.allclose(loss, ref, rtol=1e-5, atol=1e-6), (loss, ref)

    print("KERNEL_OK")
</pallas_src>

<mosaic_0001>
module attributes {stable_mosaic.version = 11 : i64} {
  func.func @_sumsq_kernel(%arg0: i32, %arg1: i32, %arg2: memref<16x128xf32, #tpu.memory_space<vmem>>, %arg3: memref<16x128xf32, #tpu.memory_space<vmem>>, %arg4: memref<1x1xf32, #tpu.memory_space<smem>>, %arg5: memref<16x128xf32, #tpu.memory_space<vmem>>) attributes {dimension_semantics = [#tpu.dimension_semantics<parallel>, #tpu.dimension_semantics<arbitrary>], iteration_bounds = array<i64: 1, 1>, scalar_prefetch = 0 : i64, scratch_operands = 1 : i64, tpu.core_type = #tpu.core_type<tc>, window_params = [{transform_indices = @transform_0, window_bounds = array<i64: 16, 128>}, {transform_indices = @transform_1, window_bounds = array<i64: 16, 128>}, {transform_indices = @transform_2, window_bounds = array<i64: 1, 1>}]} {
    %c1_i32 = arith.constant 1 : i32
    %0 = arith.muli %arg0, %c1_i32 : i32
    %1 = arith.addi %0, %arg1 : i32
    %c0_i32 = arith.constant 0 : i32
    %2 = arith.cmpi eq, %arg1, %c0_i32 : i32
    %3 = arith.extui %2 : i1 to i32
    %c0_i32_0 = arith.constant 0 : i32
    %4 = arith.cmpi ne, %3, %c0_i32_0 : i32
    scf.if %4 {
      %cst = arith.constant 0.000000e+00 : f32
      %11 = vector.broadcast %cst : f32 to vector<16x128xf32>
      %c0 = arith.constant 0 : index
      %c0_5 = arith.constant 0 : index
      %12 = vector.load %arg5[%c0, %c0_5] : memref<16x128xf32, #tpu.memory_space<vmem>>, vector<16x128xf32>
      tpu.vector_store %arg5[%c0, %c0_5], %11 {strides = array<i32>} : memref<16x128xf32, #tpu.memory_space<vmem>>, vector<16x128xf32>,
    } else {
    }
    %c1_i32_1 = arith.constant 1 : i32
    %5 = arith.cmpi slt, %1, %c1_i32_1 : i32
    %6 = arith.extui %5 : i1 to i32
    %c0_i32_2 = arith.constant 0 : i32
    %7 = arith.cmpi ne, %6, %c0_i32_2 : i32
    scf.if %7 {
      %c0 = arith.constant 0 : index
      %c0_5 = arith.constant 0 : index
      %11 = vector.load %arg2[%c0, %c0_5] : memref<16x128xf32, #tpu.memory_space<vmem>>, vector<16x128xf32>
      %c0_6 = arith.constant 0 : index
      %c0_7 = arith.constant 0 : index
      %12 = vector.load %arg3[%c0_6, %c0_7] : memref<16x128xf32, #tpu.memory_space<vmem>>, vector<16x128xf32>
      %13 = arith.subf %11, %12 : vector<16x128xf32>
      %c0_8 = arith.constant 0 : index
      %c0_9 = arith.constant 0 : index
      %14 = vector.load %arg5[%c0_8, %c0_9] : memref<16x128xf32, #tpu.memory_space<vmem>>, vector<16x128xf32>
      %15 = arith.mulf %13, %13 : vector<16x128xf32>
      %16 = arith.addf %14, %15 : vector<16x128xf32>
      %c0_10 = arith.constant 0 : index
      %c0_11 = arith.constant 0 : index
      %17 = vector.load %arg5[%c0_10, %c0_11] : memref<16x128xf32, #tpu.memory_space<vmem>>, vector<16x128xf32>
      tpu.vector_store %arg5[%c0_10, %c0_11], %16 {strides = array<i32>} : memref<16x128xf32, #tpu.memory_space<vmem>>, vector<16x128xf32>,
    } else {
    }
    %c0_i32_3 = arith.constant 0 : i32
    %8 = arith.cmpi eq, %arg1, %c0_i32_3 : i32
    %9 = arith.extui %8 : i1 to i32
    %c0_i32_4 = arith.constant 0 : i32
    %10 = arith.cmpi ne, %9, %c0_i32_4 : i32
    scf.if %10 {
      %c0 = arith.constant 0 : index
      %c0_5 = arith.constant 0 : index
      %11 = vector.load %arg5[%c0, %c0_5] : memref<16x128xf32, #tpu.memory_space<vmem>>, vector<16x128xf32>
      %12 = vector.shape_cast %11 : vector<16x128xf32> to vector<1x16x128xf32>
      %cst = arith.constant dense<0.000000e+00> : vector<1xf32>
      %13 = vector.multi_reduction <add>, %12, %cst [1, 2] : vector<1x16x128xf32> to vector<1xf32>
      %14 = vector.shape_cast %13 : vector<1xf32> to vector<1x1x1xf32>
      %15 = vector.extract %14[0, 0, 0] : f32 from vector<1x1x1xf32>
      %c0_6 = arith.constant 0 : index
      %c0_7 = arith.constant 0 : index
      %16 = memref.load %arg4[%c0_6, %c0_7] : memref<1x1xf32, #tpu.memory_space<smem>>
      memref.store %15, %arg4[%c0_6, %c0_7] : memref<1x1xf32, #tpu.memory_space<smem>>
    } else {
    }
    return
  }
  func.func @transform_0(%arg0: i32, %arg1: i32) -> (i32, i32) {
    %c1_i32 = arith.constant 1 : i32
    %0 = arith.muli %arg0, %c1_i32 : i32
    %1 = arith.addi %0, %arg1 : i32
    %c0_i32 = arith.constant 0 : i32
    %2 = arith.minsi %1, %c0_i32 : i32
    %c0_i32_0 = arith.constant 0 : i32
    %c0_i32_1 = arith.constant 0 : i32
    return %2, %c0_i32_0 : i32, i32
  }
  func.func @transform_1(%arg0: i32, %arg1: i32) -> (i32, i32) {
    %c1_i32 = arith.constant 1 : i32
    %0 = arith.muli %arg0, %c1_i32 : i32
    %1 = arith.addi %0, %arg1 : i32
    %c0_i32 = arith.constant 0 : i32
    %2 = arith.minsi %1, %c0_i32 : i32
    %c0_i32_0 = arith.constant 0 : i32
    %c0_i32_1 = arith.constant 0 : i32
    return %2, %c0_i32_0 : i32, i32
  }
  func.func @transform_2(%arg0: i32, %arg1: i32) -> (i32, i32) {
    %c0_i32 = arith.constant 0 : i32
    %c0_i32_0 = arith.constant 0 : i32
    return %arg0, %c0_i32 : i32, i32
  }
}

</mosaic_0001>

<bundles_post_ra>
// kernel: tpu_custom_call.1
= control target key start
LH: loop header
LB: loop body
LE: loop exit
PB: predicated region body
PF: predicated region fallthrough
CT: control target
= control target key end

     0   :  { %7 = vsyncpa [#allocation4], 0  ;;  %s244_s0 = inlined_call_operand.hbm [shape: f32[16,128], index: 0, kind: input, shape index: {}]   ;;  %s245_s1 = inlined_call_operand.hbm [shape: f32[16,128], index: 1, kind: input, shape index: {}]   ;;  %s246_s2 = inlined_call_operand.hbm [shape: f32[1,1], index: 2, kind: output, shape index: {}]  }
   0x1   :  { %8 = vsyncpa [#allocation7], 0 }
   0x2   :  { %9 = vsyncpa [#allocation5], 0  ;;  %s188_s9 = smov [#allocation3]   ;;  %s128_s13 = scalar_lea.hbm %s244_s0, 256 }
   0x3   :  { %s21_s10 = sshll.u32 %s188_s9, 4  ;;  %p129_p0 = scmp.ne.s32.totalorder %s244_s0, %s128_s13  ;;  %s22_s10 = int_to_ptr.vmem [resolvable:$true] %s21_s10 }
   0x4   :  { %p132_p1 = scmp.lt.u32.totalorder %s128_s13, %s244_s0 }
   0x6   :  { %p134_p2 = pnand %p132_p1, %p129_p0 }
   0x8   :  { %137 = shalt.err (!%p134_p2)
}
   0x9   :  { %s138_s18 = scalar_lea.vmem %s22_s10, 256  ;;  %p143_p4 = scmp.lt.s32.totalorder %s22_s10, %s22_s10 }
   0xa   :  { %p139_p3 = scmp.ne.s32.totalorder %s22_s10, %s138_s18  ;;  %p144_p5 = scmp.lt.s32.totalorder %s138_s18, %s138_s18 }
   0xc   :  { %p145_p6 = por %p144_p5, %p143_p4 }
   0xe   :  { %p146_p7 = pnand %p145_p6, %p139_p3 }
  0x10   :  { %149 = shalt.err (!%p146_p7)
}
  0x11   :  { %s189_s19 = smov 128   ;;  %s190_s20 = smov 8  }
  0x12   :  { %27 = dma.hbm_to_vmem [thread:$0]  %s244_s0, 256, %s22_s10, [#allocation4], %s189_s19, %s189_s19, %s190_s20  }
  0x13   :  { %s191_s23 = smov [#allocation6]   ;;  %s150_s27 = scalar_lea.hbm %s245_s1, 256 }
  0x14   :  { %s39_s24 = sshll.u32 %s191_s23, 4  ;;  %p151_p8 = scmp.ne.s32.totalorder %s245_s1, %s150_s27  ;;  %s40_s24 = int_to_ptr.vmem [resolvable:$true] %s39_s24 }
  0x15   :  { %p154_p9 = scmp.lt.u32.totalorder %s150_s27, %s245_s1 }
  0x17   :  { %p156_p10 = pnand %p154_p9, %p151_p8 }
  0x19   :  { %159 = shalt.err (!%p156_p10)
}
  0x1a   :  { %s160_s4 = scalar_lea.vmem %s40_s24, 256  ;;  %p165_p12 = scmp.lt.s32.totalorder %s40_s24, %s40_s24 }
  0x1b   :  { %p161_p11 = scmp.ne.s32.totalorder %s40_s24, %s160_s4  ;;  %p166_p13 = scmp.lt.s32.totalorder %s160_s4, %s160_s4 }
  0x1d   :  { %p167_p0 = por %p166_p13, %p165_p12 }
  0x1f   :  { %p168_p1 = pnand %p167_p0, %p161_p11 }
  0x21   :  { %171 = shalt.err (!%p168_p1)
}
  0x22   :  { %45 = dma.hbm_to_vmem [thread:$0]  %s245_s1, 256, %s40_s24, [#allocation7], %s189_s19, %s189_s19, %s190_s20  }
  0x23   :  { %182 = dma.done.wait [#allocation4], 256  }
  0x24   :  { %183 = vsyncadd [#allocation4], 4294967040 }
  0x25   :  { %184 = dma.done.wait [#allocation7], 256  }
  0x26   :  { %185 = vsyncadd [#allocation7], 4294967040  ;;  %v71_v0 = vld [vmem:[#allocation3] sm:$0xff]  ;;  %v72_v1 = vld [vmem:[#allocation3 + $0x8] sm:$0xff]  ;;  %s172_s8 = scalar_lea.hbm %s246_s2, 16 }
  0x27   :  { %v73_v2 = vld [vmem:[#allocation6] sm:$0xff]  ;;  %v74_v3 = vld [vmem:[#allocation6 + $0x8] sm:$0xff]  ;;  %p173_p2 = scmp.ne.s32.totalorder %s246_s2, %s172_s8  ;;  %p176_p3 = scmp.lt.u32.totalorder %s172_s8, %s246_s2 }
  0x28   :  { %v75_v4 = vsub.f32 %v71_v0, %v73_v2  ;;  %v76_v5 = vsub.f32 %v72_v1, %v74_v3 }
  0x29   :  { %p178_p4 = pnand %p176_p3, %p173_p2 }
  0x2a   :  { %v79_v6 = vmul.f32 %v75_v4, %v75_v4  ;;  %v80_v7 = vmul.f32 %v76_v5, %v76_v5 }
  0x2c   :  { %v90_v8 = vadd.f32 %v80_v7, %v79_v6 }
  0x2e   :  { %91 = vadd.xlane.f32.xlu0 %v90_v8 }
  0xbb   :  { %v92_v9 = vpop.xlane.xlu0 %91 }
  0xbc   :  { %v93_v10 = vrot.slane %v92_v9, 4 }
  0xbe   :  { %v94_v11 = vadd.f32 %v93_v10, %v92_v9 }
  0xc0   :  { %v95_v12 = vrot.slane %v94_v11, 2 }
  0xc2   :  { %v96_v13 = vadd.f32 %v95_v12, %v94_v11 }
  0xc4   :  { %v97_v14 = vrot.slane %v96_v13, 1 }
  0xc6   :  { %v98_v15 = vadd.f32 %v97_v14, %v96_v13 }
  0xc8   :  { %121 = vpush %v98_v15 }
  0xf9   :  { %s122_s1 = spop %121 }
  0xfa   :  { %101 = sst [smem:[#allocation8]] %s122_s1 }
  0xfb   :  { %181 = shalt.err (!%p178_p4)
}
  0xfc   :  { %s192_s13 = smov [#allocation8]  }
  0xfd   :  { %109 = dma.smem_to_hbm %s192_s13, 16, %s246_s2, [#allocation5]  }
  0xfe   :  { %186 = dma.done.wait [#allocation5], 16  }
  0xff   :  { %187 = vsyncadd [#allocation5], 4294967280 }
 0x100   :  { %113 = sfence }
 0x101   :  { %114 = vsyncpa [#allocation4], 1 }
 0x102   :  { %115 = vsyncpa [#allocation7], 1 }
 0x103   :  { %116 = vsyncpa [#allocation5], 1 }

</bundles_post_ra>
